<compile_context>
chip_gen: v5e
topology: v5e:2x2
jax: 0.10.0
libtpu: 0.0.40
codegen_flags: <defaults>
</compile_context>

<pallas_src>
import functools
import math

import jax
import jax.numpy as jnp
from jax.experimental import pallas as pl
from jax.experimental.pallas import tpu as pltpu

CONV_K, CONV_STRIDE, CONV_PAD = 3, 2, 1
LANE = 128
_VMEM_LIMIT = 32 * 1024 * 1024     # safe scoped-VMEM budget on v5e/v6e/v7x


# ------------------------------------------------------------------ tiling helpers

def _round_up(x, m):
    return (x + m - 1) // m * m


def _row_tile(n, cap):
    """Largest tile <= cap dividing n, preferring sublane-aligned multiples of 8."""
    if n <= cap:
        return n
    for t in range(cap, 0, -1):
        if n % t == 0 and t % 8 == 0:
            return t
    for t in range(cap, 0, -1):
        if n % t == 0:
            return t
    return n


def _joint_tiles(T, U, H, V, vmem_budget=12 * 1024 * 1024):
    """Cap tT*tU so (f32 tanh tile + bf16 copy + f32 logits + f32 out block) stays well
    under v7x's 64 MiB VMEM, with headroom for the double-buffered enc/dec/out blocks."""
    bytes_per_row = (4 + 2) * H + (4 + 4) * V
    max_rows = max(8, vmem_budget // bytes_per_row)
    tU = _row_tile(U, 32)
    tT = _row_tile(T, max(8, min(128, max_rows // max(tU, 1))))
    return tT, tU


# ------------------------------------------------------------------ in-kernel math

def _masked_log_softmax(logits, v_valid):
    """log_softmax over the last dim; padded vocab columns (>= v_valid) pushed to -inf-ish
    so they do not perturb the normalizer."""
    if v_valid < logits.shape[-1]:
        col = jax.lax.broadcasted_iota(jnp.int32, logits.shape, logits.ndim - 1)
        logits = jnp.where(col < v_valid, logits, -1e30)
    m = jnp.max(logits, axis=-1, keepdims=True)
    z = logits - m
    lse = jnp.log(jnp.sum(jnp.exp(z), axis=-1, keepdims=True))
    return z - lse


# ------------------------------------------------------------------ kernels

def _frontend_kernel(tT, apply_mask, v_valid, len_ref,
                     x0_ref, x1_ref, x2_ref,
                     cw0_ref, cw1_ref, cw2_ref, cb_ref,
                     memb_ref,
                     ew1_ref, eb1_ref, ew2_ref, eb2_ref, jw_ref, jb_ref,
                     aw_ref, ab_ref,
                     enc_ref, aux_ref):
    """Fused front end for one (batch, T-tile):
       Conv1d(F->D,k=3,s=2,p=1)+ReLU  ->  aux decoder (on unmasked latent)
       -> latent masking -> enc_w1/ReLU -> enc_w2 -> joint enc-projection.
    The latent stays in VMEM; it is never materialized in HBM."""
    b = pl.program_id(0)
    ti = pl.program_id(1)

    # ---- conv as 3 tap matmuls on the MXU (x0/x1/x2 = input at 2t, 2t+1, 2t+2) ----
    y = jnp.dot(x0_ref[0], cw0_ref[...], preferred_element_type=jnp.float32)
    y = y + jnp.dot(x1_ref[0], cw1_ref[...], preferred_element_type=jnp.float32)
    y = y + jnp.dot(x2_ref[0], cw2_ref[...], preferred_element_type=jnp.float32)
    latent = jnp.maximum(y + cb_ref[...], 0.0)                      # (tT, D) f32

    # ---- auxiliary (CTC-style) decoder on the UNMASKED latent ----
    aux_logits = jnp.dot(latent.astype(jnp.bfloat16), aw_ref[...],
                         preferred_element_type=jnp.float32) + ab_ref[...]
    aux_ref[0] = _masked_log_softmax(aux_logits, v_valid).astype(aux_ref.dtype)

    # ---- latent masking (speech_masking cfg "on") ----
    x = latent
    if apply_mask:
        # TODO(synk): original apply_mask samples random spans; deterministic pattern
        # (every 4th valid frame) keeps the kernel reproducible.
        t = ti * tT + jax.lax.broadcasted_iota(jnp.int32, (tT, 1), 0)
        sel = jnp.logical_and(t % 4 == 0, t < len_ref[b]).astype(jnp.float32)
        x = x * (1.0 - sel) + memb_ref[...].astype(jnp.float32) * sel

    # ---- encoder + joint enc-projection ----
    h = jnp.maximum(
        jnp.dot(x.astype(jnp.bfloat16), ew1_ref[...],
                preferred_element_type=jnp.float32) + eb1_ref[...], 0.0)
    e = jnp.dot(h.astype(jnp.bfloat16), ew2_ref[...],
                preferred_element_type=jnp.float32) + eb2_ref[...]
    ep = jnp.dot(e.astype(jnp.bfloat16), jw_ref[...],
                 preferred_element_type=jnp.float32) + jb_ref[...]
    enc_ref[0] = ep.astype(enc_ref.dtype)


def _pred_net_kernel(x_ref, w1_ref, b1_ref, w2_ref, b2_ref, o_ref):
    """Fused prediction net: ReLU(emb @ dec_w + b) @ joint_dec_w + b."""
    h = jnp.dot(x_ref[...], w1_ref[...], preferred_element_type=jnp.float32) + b1_ref[...]
    h = jnp.maximum(h, 0.0)
    y = jnp.dot(h.astype(jnp.bfloat16), w2_ref[...],
                preferred_element_type=jnp.float32) + b2_ref[...]
    o_ref[...] = y.astype(o_ref.dtype)


def _joint_kernel(tT, tU, v_valid, tlen_ref, ulen_ref,
                  enc_ref, dec_ref, w_ref, b_ref, o_ref):
    """RNNT joint tile: log_softmax(tanh(enc_t[:,None,:] + dec_u[None,:,:]) @ W + b).
    Tiles entirely past latent_len / transcript_len are skipped (filled with the uniform
    log-prob so softmax normalization stays valid on padded positions)."""
    b = pl.program_id(0)
    ti = pl.program_id(1)
    ui = pl.program_id(2)
    valid = jnp.logical_and(ti * tT < tlen_ref[b], ui * tU < ulen_ref[b])

    @pl.when(valid)
    def _():
        e = enc_ref[0].astype(jnp.float32)                        # (tT, H)
        d = dec_ref[0].astype(jnp.float32)                        # (tU, H)
        h = jnp.tanh(e[:, None, :] + d[None, :, :])               # (tT, tU, H) f32
        hb = h.reshape(tT * tU, h.shape[-1]).astype(jnp.bfloat16)
        logits = jnp.dot(hb, w_ref[...], preferred_element_type=jnp.float32) + b_ref[...]
        lp = _masked_log_softmax(logits, v_valid)
        o_ref[0] = lp.reshape(tT, tU, -1).astype(o_ref.dtype)

    @pl.when(jnp.logical_not(valid))
    def _():
        o_ref[...] = jnp.full(o_ref.shape, -math.log(v_valid), o_ref.dtype)


# ------------------------------------------------------------------ model pieces

def speech_frontend(speech_btf, speech_len, params, apply_mask):
    """Conv pre-encoder + aux decoder + masking + encoder + joint enc-projection,
    one Pallas kernel tiled over (B, T). Returns (enc_proj, aux_log_probs_padded, latent_len)."""
    B, T, F = speech_btf.shape
    D = params["conv_w0"].shape[1]
    H = params["enc_w1"].shape[1]
    Vp = params["aux_w"].shape[1]
    v_valid = params["v_valid"]

    T_out = (T + 2 * CONV_PAD - CONV_K) // CONV_STRIDE + 1
    L = 2 * (T_out + 1)
    # XLA glue: pad once, then build the three shifted slabs (positions 2t, 2t+1, 2t+2).
    x_pad = jnp.pad(speech_btf.astype(jnp.bfloat16),
                    ((0, 0), (CONV_PAD, L - T - CONV_PAD), (0, 0)))
    xp = x_pad.reshape(B, T_out + 1, 2, F)
    x0 = xp[:, :T_out, 0, :]
    x1 = xp[:, :T_out, 1, :]
    x2 = xp[:, 1:, 0, :]

    latent_len = (speech_len + 2 * CONV_PAD - CONV_K) // CONV_STRIDE + 1

    tT = _row_tile(T_out, 128)

    def xmap(b, ti, lens):
        return (b, ti, 0)

    def wmap(b, ti, lens):
        return (0, 0)

    in_specs = [
        pl.BlockSpec((1, tT, F), xmap),
        pl.BlockSpec((1, tT, F), xmap),
        pl.BlockSpec((1, tT, F), xmap),
        pl.BlockSpec((F, D), wmap),
        pl.BlockSpec((F, D), wmap),
        pl.BlockSpec((F, D), wmap),
        pl.BlockSpec((1, D), wmap),
        pl.BlockSpec((1, D), wmap),
        pl.BlockSpec((D, H), wmap),
        pl.BlockSpec((1, H), wmap),
        pl.BlockSpec((H, H), wmap),
        pl.BlockSpec((1, H), wmap),
        pl.BlockSpec((H, H), wmap),
        pl.BlockSpec((1, H), wmap),
        pl.BlockSpec((D, Vp), wmap),
        pl.BlockSpec((1, Vp), wmap),
    ]
    out_specs = [
        pl.BlockSpec((1, tT, H), xmap),
        pl.BlockSpec((1, tT, Vp), xmap),
    ]
    out_shape = (jax.ShapeDtypeStruct((B, T_out, H), jnp.bfloat16),
                 jax.ShapeDtypeStruct((B, T_out, Vp), jnp.float32))

    enc_p, aux_lp = pl.pallas_call(
        functools.partial(_frontend_kernel, tT, apply_mask, v_valid),
        out_shape=out_shape,
        grid_spec=pltpu.PrefetchScalarGridSpec(
            num_scalar_prefetch=1,
            grid=(B, T_out // tT),
            in_specs=in_specs,
            out_specs=out_specs),
        compiler_params=pltpu.CompilerParams(
            dimension_semantics=("parallel", "parallel"),
            vmem_limit_bytes=_VMEM_LIMIT),
    )(latent_len.astype(jnp.int32), x0, x1, x2,
      params["conv_w0"], params["conv_w1"], params["conv_w2"], params["conv_b"],
      params["mask_emb"],
      params["enc_w1"], params["enc_b1"], params["enc_w2"], params["enc_b2"],
      params["joint_enc_w"], params["joint_enc_b"],
      params["aux_w"], params["aux_b"])
    return enc_p, aux_lp, latent_len


def prediction_net_fused(transcript, params):
    """Embedding gather (XLA glue) + fused dec / joint-dec projections in Pallas."""
    emb = jnp.take(params["embed"], transcript, axis=0)           # (B, U, H) bf16
    B, U, H = emb.shape
    M = B * U
    tm = _row_tile(M, 256)
    dec_p = pl.pallas_call(
        _pred_net_kernel,
        out_shape=jax.ShapeDtypeStruct((M, H), jnp.bfloat16),
        grid=(M // tm,),
        in_specs=[
            pl.BlockSpec((tm, H), lambda i: (i, 0)),
            pl.BlockSpec((H, H), lambda i: (0, 0)),
            pl.BlockSpec((1, H), lambda i: (0, 0)),
            pl.BlockSpec((H, H), lambda i: (0, 0)),
            pl.BlockSpec((1, H), lambda i: (0, 0)),
        ],
        out_specs=pl.BlockSpec((tm, H), lambda i: (i, 0)),
        compiler_params=pltpu.CompilerParams(
            dimension_semantics=("parallel",),
            vmem_limit_bytes=_VMEM_LIMIT),
    )(emb.reshape(M, H), params["dec_w"], params["dec_b"],
      params["joint_dec_w"], params["joint_dec_b"])
    return dec_p.reshape(B, U, H)


def pallas_joint(enc_p, dec_p, latent_len, transcript_len, params):
    B, T, H = enc_p.shape
    _, U, _ = dec_p.shape
    Vp = params["joint_out_w"].shape[1]
    v_valid = params["v_valid"]
    tT, tU = _joint_tiles(T, U, H, Vp)
    log_probs = pl.pallas_call(
        functools.partial(_joint_kernel, tT, tU, v_valid),
        out_shape=jax.ShapeDtypeStruct((B, T, U, Vp), jnp.float32),
        grid_spec=pltpu.PrefetchScalarGridSpec(
            num_scalar_prefetch=2,
            grid=(B, T // tT, U // tU),
            in_specs=[
                pl.BlockSpec((1, tT, H), lambda b, ti, ui, tl, ul: (b, ti, 0)),
                pl.BlockSpec((1, tU, H), lambda b, ti, ui, tl, ul: (b, ui, 0)),
                pl.BlockSpec((H, Vp), lambda b, ti, ui, tl, ul: (0, 0)),
                pl.BlockSpec((1, Vp), lambda b, ti, ui, tl, ul: (0, 0)),
            ],
            out_specs=pl.BlockSpec((1, tT, tU, Vp),
                                   lambda b, ti, ui, tl, ul: (b, ti, ui, 0)),
        ),
        compiler_params=pltpu.CompilerParams(
            dimension_semantics=("parallel", "parallel", "parallel"),
            vmem_limit_bytes=_VMEM_LIMIT),
    )(latent_len.astype(jnp.int32), transcript_len.astype(jnp.int32),
      enc_p, dec_p, params["joint_out_w"], params["joint_out_b"])
    if Vp > v_valid:
        log_probs = log_probs[..., :v_valid]
    return log_probs


def flap_transducer_forward(*, text, text_len, speech, speech_len, transcript,
                            transcript_len, params, mask=True,
                            freeze_auxiliary_decoder=False):
    """Forward semantics of FLAPTransducerModel (speech path; auxiliary decoder present)."""
    if text is not None:
        # TODO(synk): text_projector / use_dpm_text_projector branch not exercised here.
        raise NotImplementedError("synthetic kernel implements the speech path only")
    enc_p, aux_lp_padded, latent_len = speech_frontend(speech, speech_len, params,
                                                       apply_mask=mask)
    dec_p = prediction_net_fused(transcript, params)
    log_probs = pallas_joint(enc_p, dec_p, latent_len, transcript_len, params)
    results = (log_probs, latent_len, transcript_len)

    # freeze_auxiliary_decoder only disables gradients in PyTorch -> no-op for pure forward.
    v_valid = params["v_valid"]
    aux_lp = (aux_lp_padded[..., :v_valid]
              if aux_lp_padded.shape[-1] > v_valid else aux_lp_padded)
    extra = {"aux_decoder_log_probs": aux_lp,
             "aux_decoder_log_probs_len": latent_len}
    return results + (extra,)


# ------------------------------------------------------------------ params

def init_params(key, F, D, H, V):
    """Matmul operands stored in bf16 once (casts hoisted out of the call path);
    biases in f32 as (1, N). V is the logical vocab; vocab-sized weights are padded
    to a lane-dense multiple of 128 and padded columns are zero / masked in-kernel."""
    Vp = _round_up(V, LANE)
    ks = jax.random.split(key, 21)

    def w(k, shape, scale=0.1):
        return (scale * jax.random.normal(k, shape, jnp.float32)).astype(jnp.bfloat16)

    def bias(k, n):
        return 0.1 * jax.random.normal(k, (1, n), jnp.float32)

    def pad_cols(x, n_to):
        pad = n_to - x.shape[-1]
        return x if pad == 0 else jnp.pad(x, ((0, 0), (0, pad)))

    return {
        "conv_w0": w(ks[0], (F, D)),
        "conv_w1": w(ks[1], (F, D)),
        "conv_w2": w(ks[2], (F, D)),
        "conv_b": bias(ks[3], D),
        "enc_w1": w(ks[4], (D, H)), "enc_b1": bias(ks[5], H),
        "enc_w2": w(ks[6], (H, H)), "enc_b2": bias(ks[7], H),
        "embed": w(ks[8], (V, H)),
        "dec_w": w(ks[9], (H, H)), "dec_b": bias(ks[10], H),
        "joint_enc_w": w(ks[11], (H, H)), "joint_enc_b": bias(ks[12], H),
        "joint_dec_w": w(ks[13], (H, H)), "joint_dec_b": bias(ks[14], H),
        "joint_out_w": pad_cols(w(ks[15], (H, V)), Vp),
        "joint_out_b": pad_cols(bias(ks[16], V), Vp),
        "aux_w": pad_cols(w(ks[17], (D, V)), Vp),
        "aux_b": pad_cols(bias(ks[19], V), Vp),
        # torch.FloatTensor(mask_emb_dim).uniform_()
        "mask_emb": jax.random.uniform(ks[18], (1, D), jnp.float32),
        "v_valid": V,
    }


# ------------------------------------------------------------------ main

if __name__ == "__main__":
    # Small but lane-dense shapes: D = H = V = 128 (MXU/lane aligned), F = 128 features.
    B, F, T = 2, 128, 16        # speech: PyTorch layout (B, F, T)
    D, H = 128, 128             # latent dim / hidden dim
    U, V = 8, 128               # transcript length / vocab size

    key = jax.random.PRNGKey(0)
    k_speech, k_tr, k_param = jax.random.split(key, 3)

    speech_nct = jax.random.normal(k_speech, (B, F, T), jnp.float32)   # PyTorch NCW
    speech_btf = jnp.transpose(speech_nct, (0, 2, 1))                  # kernel layout (B, T, F)
    speech_len = jnp.array([16, 12], jnp.int32)
    transcript = jax.random.randint(k_tr, (B, U), 0, V, jnp.int32)
    transcript_len = jnp.array([8, 6], jnp.int32)

    params = init_params(k_param, F, D, H, V)

    out = flap_transducer_forward(
        text=None, text_len=None,
        speech=speech_btf, speech_len=speech_len,
        transcript=transcript, transcript_len=transcript_len,
        params=params, mask=True,
    )
    out = jax.block_until_ready(out)

    joint_log_probs, latent_len, tlen, extra = out
    T_out = (T + 2 * CONV_PAD - CONV_K) // CONV_STRIDE + 1
    assert joint_log_probs.shape == (B, T_out, U, V)
    assert extra["aux_decoder_log_probs"].shape == (B, T_out, V)
    assert bool(jnp.all(jnp.isfinite(joint_log_probs)))
    assert bool(jnp.all(jnp.isfinite(extra["aux_decoder_log_probs"])))
    # log-softmax sanity: probabilities over the vocab sum to 1 everywhere
    assert bool(jnp.allclose(jnp.exp(joint_log_probs).sum(-1), 1.0, atol=2e-3))
    assert bool(jnp.allclose(jnp.exp(extra["aux_decoder_log_probs"]).sum(-1), 1.0, atol=2e-3))
    print("KERNEL_OK")
</pallas_src>

<mosaic_0001>
module attributes {stable_mosaic.version = 11 : i64} {
  func.func @_frontend_kernel(%arg0: i32, %arg1: i32, %arg2: memref<2xi32, #tpu.memory_space<smem>>, %arg3: memref<1x8x128xbf16, #tpu.memory_space<vmem>>, %arg4: memref<1x8x128xbf16, #tpu.memory_space<vmem>>, %arg5: memref<1x8x128xbf16, #tpu.memory_space<vmem>>, %arg6: memref<128x128xbf16, #tpu.memory_space<vmem>>, %arg7: memref<128x128xbf16, #tpu.memory_space<vmem>>, %arg8: memref<128x128xbf16, #tpu.memory_space<vmem>>, %arg9: memref<1x128xf32, #tpu.memory_space<vmem>>, %arg10: memref<1x128xf32, #tpu.memory_space<vmem>>, %arg11: memref<128x128xbf16, #tpu.memory_space<vmem>>, %arg12: memref<1x128xf32, #tpu.memory_space<vmem>>, %arg13: memref<128x128xbf16, #tpu.memory_space<vmem>>, %arg14: memref<1x128xf32, #tpu.memory_space<vmem>>, %arg15: memref<128x128xbf16, #tpu.memory_space<vmem>>, %arg16: memref<1x128xf32, #tpu.memory_space<vmem>>, %arg17: memref<128x128xbf16, #tpu.memory_space<vmem>>, %arg18: memref<1x128xf32, #tpu.memory_space<vmem>>, %arg19: memref<1x8x128xbf16, #tpu.memory_space<vmem>>, %arg20: memref<1x8x128xf32, #tpu.memory_space<vmem>>) attributes {dimension_semantics = [#tpu.dimension_semantics<parallel>, #tpu.dimension_semantics<parallel>], iteration_bounds = array<i64: 2, 1>, scalar_prefetch = 1 : i64, scratch_operands = 0 : i64, tpu.core_type = #tpu.core_type<tc>, window_params = [{transform_indices = @transform_0, window_bounds = array<i64: 1, 8, 128>}, {transform_indices = @transform_1, window_bounds = array<i64: 1, 8, 128>}, {transform_indices = @transform_2, window_bounds = array<i64: 1, 8, 128>}, {pipeline_mode = #tpu.pipeline_mode<synchronous>, transform_indices = @transform_3, window_bounds = array<i64: 128, 128>}, {pipeline_mode = #tpu.pipeline_mode<synchronous>, transform_indices = @transform_4, window_bounds = array<i64: 128, 128>}, {pipeline_mode = #tpu.pipeline_mode<synchronous>, transform_indices = @transform_5, window_bounds = array<i64: 128, 128>}, {pipeline_mode = #tpu.pipeline_mode<synchronous>, transform_indices = @transform_6, window_bounds = array<i64: 1, 128>}, {pipeline_mode = #tpu.pipeline_mode<synchronous>, transform_indices = @transform_7, window_bounds = array<i64: 1, 128>}, {pipeline_mode = #tpu.pipeline_mode<synchronous>, transform_indices = @transform_8, window_bounds = array<i64: 128, 128>}, {pipeline_mode = #tpu.pipeline_mode<synchronous>, transform_indices = @transform_9, window_bounds = array<i64: 1, 128>}, {pipeline_mode = #tpu.pipeline_mode<synchronous>, transform_indices = @transform_10, window_bounds = array<i64: 128, 128>}, {pipeline_mode = #tpu.pipeline_mode<synchronous>, transform_indices = @transform_11, window_bounds = array<i64: 1, 128>}, {pipeline_mode = #tpu.pipeline_mode<synchronous>, transform_indices = @transform_12, window_bounds = array<i64: 128, 128>}, {pipeline_mode = #tpu.pipeline_mode<synchronous>, transform_indices = @transform_13, window_bounds = array<i64: 1, 128>}, {pipeline_mode = #tpu.pipeline_mode<synchronous>, transform_indices = @transform_14, window_bounds = array<i64: 128, 128>}, {pipeline_mode = #tpu.pipeline_mode<synchronous>, transform_indices = @transform_15, window_bounds = array<i64: 1, 128>}, {transform_indices = @transform_16, window_bounds = array<i64: 1, 8, 128>}, {transform_indices = @transform_17, window_bounds = array<i64: 1, 8, 128>}]} {
    %c0 = arith.constant 0 : index
    %c0_0 = arith.constant 0 : index
    %c0_1 = arith.constant 0 : index
    %0 = vector.load %arg3[%c0, %c0_0, %c0_1] : memref<1x8x128xbf16, #tpu.memory_space<vmem>>, vector<1x8x128xbf16>
    %1 = vector.shape_cast %0 : vector<1x8x128xbf16> to vector<8x128xbf16>
    %c0_2 = arith.constant 0 : index
    %c0_3 = arith.constant 0 : index
    %2 = vector.load %arg6[%c0_2, %c0_3] : memref<128x128xbf16, #tpu.memory_space<vmem>>, vector<128x128xbf16>
    %cst = arith.constant dense<0.000000e+00> : vector<8x128xf32>
    %3 = tpu.matmul %1, %2, %cst {dimension_numbers = #tpu.dot_dimension_numbers<[1], [0], [0], [1], [0, 0, 1, 1], [], []>} : vector<8x128xbf16>, vector<128x128xbf16>, vector<8x128xf32> -> vector<8x128xf32>
    %c0_4 = arith.constant 0 : index
    %c0_5 = arith.constant 0 : index
    %c0_6 = arith.constant 0 : index
    %4 = vector.load %arg4[%c0_4, %c0_5, %c0_6] : memref<1x8x128xbf16, #tpu.memory_space<vmem>>, vector<1x8x128xbf16>
    %5 = vector.shape_cast %4 : vector<1x8x128xbf16> to vector<8x128xbf16>
    %c0_7 = arith.constant 0 : index
    %c0_8 = arith.constant 0 : index
    %6 = vector.load %arg7[%c0_7, %c0_8] : memref<128x128xbf16, #tpu.memory_space<vmem>>, vector<128x128xbf16>
    %cst_9 = arith.constant dense<0.000000e+00> : vector<8x128xf32>
    %7 = tpu.matmul %5, %6, %cst_9 {dimension_numbers = #tpu.dot_dimension_numbers<[1], [0], [0], [1], [0, 0, 1, 1], [], []>} : vector<8x128xbf16>, vector<128x128xbf16>, vector<8x128xf32> -> vector<8x128xf32>
    %8 = arith.addf %3, %7 : vector<8x128xf32>
    %c0_10 = arith.constant 0 : index
    %c0_11 = arith.constant 0 : index
    %c0_12 = arith.constant 0 : index
    %9 = vector.load %arg5[%c0_10, %c0_11, %c0_12] : memref<1x8x128xbf16, #tpu.memory_space<vmem>>, vector<1x8x128xbf16>
    %10 = vector.shape_cast %9 : vector<1x8x128xbf16> to vector<8x128xbf16>
    %c0_13 = arith.constant 0 : index
    %c0_14 = arith.constant 0 : index
    %11 = vector.load %arg8[%c0_13, %c0_14] : memref<128x128xbf16, #tpu.memory_space<vmem>>, vector<128x128xbf16>
    %cst_15 = arith.constant dense<0.000000e+00> : vector<8x128xf32>
    %12 = tpu.matmul %10, %11, %cst_15 {dimension_numbers = #tpu.dot_dimension_numbers<[1], [0], [0], [1], [0, 0, 1, 1], [], []>} : vector<8x128xbf16>, vector<128x128xbf16>, vector<8x128xf32> -> vector<8x128xf32>
    %13 = arith.addf %8, %12 : vector<8x128xf32>
    %c0_16 = arith.constant 0 : index
    %c0_17 = arith.constant 0 : index
    %14 = vector.load %arg9[%c0_16, %c0_17] : memref<1x128xf32, #tpu.memory_space<vmem>>, vector<1x128xf32>
    %15 = vector.broadcast %14 : vector<1x128xf32> to vector<8x128xf32>
    %16 = arith.addf %13, %15 : vector<8x128xf32>
    %cst_18 = arith.constant 0.000000e+00 : f32
    %17 = vector.broadcast %cst_18 : f32 to vector<8x128xf32>
    %18 = arith.maximumf %16, %17 : vector<8x128xf32>
    %19 = arith.truncf %18 : vector<8x128xf32> to vector<8x128xbf16>
    %c0_19 = arith.constant 0 : index
    %c0_20 = arith.constant 0 : index
    %20 = vector.load %arg17[%c0_19, %c0_20] : memref<128x128xbf16, #tpu.memory_space<vmem>>, vector<128x128xbf16>
    %cst_21 = arith.constant dense<0.000000e+00> : vector<8x128xf32>
    %21 = tpu.matmul %19, %20, %cst_21 {dimension_numbers = #tpu.dot_dimension_numbers<[1], [0], [0], [1], [0, 0, 1, 1], [], []>} : vector<8x128xbf16>, vector<128x128xbf16>, vector<8x128xf32> -> vector<8x128xf32>
    %c0_22 = arith.constant 0 : index
    %c0_23 = arith.constant 0 : index
    %22 = vector.load %arg18[%c0_22, %c0_23] : memref<1x128xf32, #tpu.memory_space<vmem>>, vector<1x128xf32>
    %23 = vector.broadcast %22 : vector<1x128xf32> to vector<8x128xf32>
    %24 = arith.addf %21, %23 : vector<8x128xf32>
    %cst_24 = arith.constant dense<0xFF800000> : vector<8xf32>
    %25 = vector.multi_reduction <maximumf>, %24, %cst_24 [1] : vector<8x128xf32> to vector<8xf32>
    %26 = vector.shape_cast %25 : vector<8xf32> to vector<8x1xf32>
    %27 = vector.broadcast %26 : vector<8x1xf32> to vector<8x128xf32>
    %28 = arith.subf %24, %27 : vector<8x128xf32>
    %29 = math.exp %28 : vector<8x128xf32>
    %cst_25 = arith.constant dense<0.000000e+00> : vector<8xf32>
    %30 = vector.multi_reduction <add>, %29, %cst_25 [1] : vector<8x128xf32> to vector<8xf32>
    %31 = vector.shape_cast %30 : vector<8xf32> to vector<8x1xf32>
    %32 = math.log %31 : vector<8x1xf32>
    %33 = vector.broadcast %32 : vector<8x1xf32> to vector<8x128xf32>
    %34 = arith.subf %28, %33 : vector<8x128xf32>
    %c0_26 = arith.constant 0 : index
    %c0_27 = arith.constant 0 : index
    %c0_28 = arith.constant 0 : index
    %35 = vector.load %arg20[%c0_26, %c0_27, %c0_28] : memref<1x8x128xf32, #tpu.memory_space<vmem>>, vector<1x8x128xf32>
    %36 = vector.shape_cast %35 : vector<1x8x128xf32> to vector<8x128xf32>
    %37 = vector.shape_cast %34 : vector<8x128xf32> to vector<1x8x128xf32>
    tpu.vector_store %arg20[%c0_26, %c0_27, %c0_28], %37 {strides = array<i32>} : memref<1x8x128xf32, #tpu.memory_space<vmem>>, vector<1x8x128xf32>,
    %c8_i32 = arith.constant 8 : i32
    %38 = arith.muli %arg1, %c8_i32 : i32
    %39 = tpu.iota {dimensions = array<i32: 0>} : vector<8x1xi32>
    %40 = vector.broadcast %38 : i32 to vector<8x1xi32>
    %41 = arith.addi %40, %39 : vector<8x1xi32>
    %c4_i32 = arith.constant 4 : i32
    %c0_i32 = arith.constant 0 : i32
    %42 = arith.cmpi eq, %c4_i32, %c0_i32 : i32
    %c1_i32 = arith.constant 1 : i32
    %43 = arith.select %42, %c1_i32, %c4_i32 : i32
    %44 = vector.broadcast %43 : i32 to vector<8x1xi32>
    %45 = arith.remsi %41, %44 : vector<8x1xi32>
    %c0_i32_29 = arith.constant 0 : i32
    %46 = vector.broadcast %c0_i32_29 : i32 to vector<8x1xi32>
    %47 = arith.cmpi ne, %45, %46 : vector<8x1xi32>
    %c0_i32_30 = arith.constant 0 : i32
    %48 = vector.broadcast %c0_i32_30 : i32 to vector<8x1xi32>
    %49 = arith.cmpi slt, %45, %48 : vector<8x1xi32>
    %c0_i32_31 = arith.constant 0 : i32
    %50 = arith.cmpi slt, %43, %c0_i32_31 : i32
    %51 = vector.broadcast %50 : i1 to vector<8x1xi1>
    %52 = vector.broadcast %51 : vector<8x1xi1> to vector<8x1xi1>
    %53 = arith.xori %49, %52 : vector<8x1xi1>
    %54 = arith.andi %53, %47 : vector<8x1xi1>
    %55 = vector.broadcast %43 : i32 to vector<8x1xi32>
    %56 = arith.addi %45, %55 : vector<8x1xi32>
    %57 = arith.select %54, %56, %45 : vector<8x1xi1>, vector<8x1xi32>
    %c0_i32_32 = arith.constant 0 : i32
    %58 = vector.broadcast %c0_i32_32 : i32 to vector<8x1xi32>
    %59 = arith.cmpi eq, %57, %58 : vector<8x1xi32>
    %60 = arith.index_cast %arg0 : i32 to index
    %61 = memref.load %arg2[%60] : memref<2xi32, #tpu.memory_space<smem>>
    %62 = vector.broadcast %61 : i32 to vector<8x1xi32>
    %63 = arith.cmpi slt, %41, %62 : vector<8x1xi32>
    %64 = arith.andi %59, %63 : vector<8x1xi1>
    %65 = arith.extui %64 : vector<8x1xi1> to vector<8x1xi32>
    %66 = arith.sitofp %65 : vector<8x1xi32> to vector<8x1xf32>
    %cst_33 = arith.constant 1.000000e+00 : f32
    %67 = vector.broadcast %cst_33 : f32 to vector<8x1xf32>
    %68 = arith.subf %67, %66 : vector<8x1xf32>
    %69 = vector.broadcast %68 : vector<8x1xf32> to vector<8x128xf32>
    %70 = arith.mulf %18, %69 : vector<8x128xf32>
    %c0_34 = arith.constant 0 : index
    %c0_35 = arith.constant 0 : index
    %71 = vector.load %arg10[%c0_34, %c0_35] : memref<1x128xf32, #tpu.memory_space<vmem>>, vector<1x128xf32>
    %72 = vector.broadcast %71 : vector<1x128xf32> to vector<8x128xf32>
    %73 = vector.broadcast %66 : vector<8x1xf32> to vector<8x128xf32>
    %74 = arith.mulf %72, %73 : vector<8x128xf32>
    %75 = arith.addf %70, %74 : vector<8x128xf32>
    %76 = arith.truncf %75 : vector<8x128xf32> to vector<8x128xbf16>
    %c0_36 = arith.constant 0 : index
    %c0_37 = arith.constant 0 : index
    %77 = vector.load %arg11[%c0_36, %c0_37] : memref<128x128xbf16, #tpu.memory_space<vmem>>, vector<128x128xbf16>
    %cst_38 = arith.constant dense<0.000000e+00> : vector<8x128xf32>
    %78 = tpu.matmul %76, %77, %cst_38 {dimension_numbers = #tpu.dot_dimension_numbers<[1], [0], [0], [1], [0, 0, 1, 1], [], []>} : vector<8x128xbf16>, vector<128x128xbf16>, vector<8x128xf32> -> vector<8x128xf32>
    %c0_39 = arith.constant 0 : index
    %c0_40 = arith.constant 0 : index
    %79 = vector.load %arg12[%c0_39, %c0_40] : memref<1x128xf32, #tpu.memory_space<vmem>>, vector<1x128xf32>
    %80 = vector.broadcast %79 : vector<1x128xf32> to vector<8x128xf32>
    %81 = arith.addf %78, %80 : vector<8x128xf32>
    %cst_41 = arith.constant 0.000000e+00 : f32
    %82 = vector.broadcast %cst_41 : f32 to vector<8x128xf32>
    %83 = arith.maximumf %81, %82 : vector<8x128xf32>
    %84 = arith.truncf %83 : vector<8x128xf32> to vector<8x128xbf16>
    %c0_42 = arith.constant 0 : index
    %c0_43 = arith.constant 0 : index
    %85 = vector.load %arg13[%c0_42, %c0_43] : memref<128x128xbf16, #tpu.memory_space<vmem>>, vector<128x128xbf16>
    %cst_44 = arith.constant dense<0.000000e+00> : vector<8x128xf32>
    %86 = tpu.matmul %84, %85, %cst_44 {dimension_numbers = #tpu.dot_dimension_numbers<[1], [0], [0], [1], [0, 0, 1, 1], [], []>} : vector<8x128xbf16>, vector<128x128xbf16>, vector<8x128xf32> -> vector<8x128xf32>
    %c0_45 = arith.constant 0 : index
    %c0_46 = arith.constant 0 : index
    %87 = vector.load %arg14[%c0_45, %c0_46] : memref<1x128xf32, #tpu.memory_space<vmem>>, vector<1x128xf32>
    %88 = vector.broadcast %87 : vector<1x128xf32> to vector<8x128xf32>
    %89 = arith.addf %86, %88 : vector<8x128xf32>
    %90 = arith.truncf %89 : vector<8x128xf32> to vector<8x128xbf16>
    %c0_47 = arith.constant 0 : index
    %c0_48 = arith.constant 0 : index
    %91 = vector.load %arg15[%c0_47, %c0_48] : memref<128x128xbf16, #tpu.memory_space<vmem>>, vector<128x128xbf16>
    %cst_49 = arith.constant dense<0.000000e+00> : vector<8x128xf32>
    %92 = tpu.matmul %90, %91, %cst_49 {dimension_numbers = #tpu.dot_dimension_numbers<[1], [0], [0], [1], [0, 0, 1, 1], [], []>} : vector<8x128xbf16>, vector<128x128xbf16>, vector<8x128xf32> -> vector<8x128xf32>
    %c0_50 = arith.constant 0 : index
    %c0_51 = arith.constant 0 : index
    %93 = vector.load %arg16[%c0_50, %c0_51] : memref<1x128xf32, #tpu.memory_space<vmem>>, vector<1x128xf32>
    %94 = vector.broadcast %93 : vector<1x128xf32> to vector<8x128xf32>
    %95 = arith.addf %92, %94 : vector<8x128xf32>
    %96 = arith.truncf %95 : vector<8x128xf32> to vector<8x128xbf16>
    %c0_52 = arith.constant 0 : index
    %c0_53 = arith.constant 0 : index
    %c0_54 = arith.constant 0 : index
    %97 = vector.load %arg19[%c0_52, %c0_53, %c0_54] : memref<1x8x128xbf16, #tpu.memory_space<vmem>>, vector<1x8x128xbf16>
    %98 = vector.shape_cast %97 : vector<1x8x128xbf16> to vector<8x128xbf16>
    %99 = vector.shape_cast %96 : vector<8x128xbf16> to vector<1x8x128xbf16>
    tpu.vector_store %arg19[%c0_52, %c0_53, %c0_54], %99 {strides = array<i32>} : memref<1x8x128xbf16, #tpu.memory_space<vmem>>, vector<1x8x128xbf16>,
    return
  }
  func.func @transform_0(%arg0: i32, %arg1: i32, %arg2: memref<2xi32, #tpu.memory_space<smem>>) -> (i32, i32, i32) {
    %c0_i32 = arith.constant 0 : i32
    %c0_i32_0 = arith.constant 0 : i32
    return %arg0, %arg1, %c0_i32 : i32, i32, i32
  }
  func.func @transform_1(%arg0: i32, %arg1: i32, %arg2: memref<2xi32, #tpu.memory_space<smem>>) -> (i32, i32, i32) {
    %c0_i32 = arith.constant 0 : i32
    %c0_i32_0 = arith.constant 0 : i32
    return %arg0, %arg1, %c0_i32 : i32, i32, i32
  }
  func.func @transform_2(%arg0: i32, %arg1: i32, %arg2: memref<2xi32, #tpu.memory_space<smem>>) -> (i32, i32, i32) {
    %c0_i32 = arith.constant 0 : i32
    %c0_i32_0 = arith.constant 0 : i32
    return %arg0, %arg1, %c0_i32 : i32, i32, i32
  }
  func.func @transform_3(%arg0: i32, %arg1: i32, %arg2: memref<2xi32, #tpu.memory_space<smem>>) -> (i32, i32) {
    %c0_i32 = arith.constant 0 : i32
    %c0_i32_0 = arith.constant 0 : i32
    %c0_i32_1 = arith.constant 0 : i32
    return %c0_i32, %c0_i32_0 : i32, i32
  }
  func.func @transform_4(%arg0: i32, %arg1: i32, %arg2: memref<2xi32, #tpu.memory_space<smem>>) -> (i32, i32) {
    %c0_i32 = arith.constant 0 : i32
    %c0_i32_0 = arith.constant 0 : i32
    %c0_i32_1 = arith.constant 0 : i32
    return %c0_i32, %c0_i32_0 : i32, i32
  }
  func.func @transform_5(%arg0: i32, %arg1: i32, %arg2: memref<2xi32, #tpu.memory_space<smem>>) -> (i32, i32) {
    %c0_i32 = arith.constant 0 : i32
    %c0_i32_0 = arith.constant 0 : i32
    %c0_i32_1 = arith.constant 0 : i32
    return %c0_i32, %c0_i32_0 : i32, i32
  }
  func.func @transform_6(%arg0: i32, %arg1: i32, %arg2: memref<2xi32, #tpu.memory_space<smem>>) -> (i32, i32) {
    %c0_i32 = arith.constant 0 : i32
    %c0_i32_0 = arith.constant 0 : i32
    %c0_i32_1 = arith.constant 0 : i32
    return %c0_i32, %c0_i32_0 : i32, i32
  }
  func.func @transform_7(%arg0: i32, %arg1: i32, %arg2: memref<2xi32, #tpu.memory_space<smem>>) -> (i32, i32) {
    %c0_i32 = arith.constant 0 : i32
    %c0_i32_0 = arith.constant 0 : i32
    %c0_i32_1 = arith.constant 0 : i32
    return %c0_i32, %c0_i32_0 : i32, i32
  }
  func.func @transform_8(%arg0: i32, %arg1: i32, %arg2: memref<2xi32, #tpu.memory_space<smem>>) -> (i32, i32) {
    %c0_i32 = arith.constant 0 : i32
    %c0_i32_0 = arith.constant 0 : i32
    %c0_i32_1 = arith.constant 0 : i32
    return %c0_i32, %c0_i32_0 : i32, i32
  }
  func.func @transform_9(%arg0: i32, %arg1: i32, %arg2: memref<2xi32, #tpu.memory_space<smem>>) -> (i32, i32) {
    %c0_i32 = arith.constant 0 : i32
    %c0_i32_0 = arith.constant 0 : i32
    %c0_i32_1 = arith.constant 0 : i32
    return %c0_i32, %c0_i32_0 : i32, i32
  }
  func.func @transform_10(%arg0: i32, %arg1: i32, %arg2: memref<2xi32, #tpu.memory_space<smem>>) -> (i32, i32) {
    %c0_i32 = arith.constant 0 : i32
    %c0_i32_0 = arith.constant 0 : i32
    %c0_i32_1 = arith.constant 0 : i32
    return %c0_i32, %c0_i32_0 : i32, i32
  }
  func.func @transform_11(%arg0: i32, %arg1: i32, %arg2: memref<2xi32, #tpu.memory_space<smem>>) -> (i32, i32) {
    %c0_i32 = arith.constant 0 : i32
    %c0_i32_0 = arith.constant 0 : i32
    %c0_i32_1 = arith.constant 0 : i32
    return %c0_i32, %c0_i32_0 : i32, i32
  }
  func.func @transform_12(%arg0: i32, %arg1: i32, %arg2: memref<2xi32, #tpu.memory_space<smem>>) -> (i32, i32) {
    %c0_i32 = arith.constant 0 : i32
    %c0_i32_0 = arith.constant 0 : i32
    %c0_i32_1 = arith.constant 0 : i32
    return %c0_i32, %c0_i32_0 : i32, i32
  }
  func.func @transform_13(%arg0: i32, %arg1: i32, %arg2: memref<2xi32, #tpu.memory_space<smem>>) -> (i32, i32) {
    %c0_i32 = arith.constant 0 : i32
    %c0_i32_0 = arith.constant 0 : i32
    %c0_i32_1 = arith.constant 0 : i32
    return %c0_i32, %c0_i32_0 : i32, i32
  }
  func.func @transform_14(%arg0: i32, %arg1: i32, %arg2: memref<2xi32, #tpu.memory_space<smem>>) -> (i32, i32) {
    %c0_i32 = arith.constant 0 : i32
    %c0_i32_0 = arith.constant 0 : i32
    %c0_i32_1 = arith.constant 0 : i32
    return %c0_i32, %c0_i32_0 : i32, i32
  }
  func.func @transform_15(%arg0: i32, %arg1: i32, %arg2: memref<2xi32, #tpu.memory_space<smem>>) -> (i32, i32) {
    %c0_i32 = arith.constant 0 : i32
    %c0_i32_0 = arith.constant 0 : i32
    %c0_i32_1 = arith.constant 0 : i32
    return %c0_i32, %c0_i32_0 : i32, i32
  }
  func.func @transform_16(%arg0: i32, %arg1: i32, %arg2: memref<2xi32, #tpu.memory_space<smem>>) -> (i32, i32, i32) {
    %c0_i32 = arith.constant 0 : i32
    %c0_i32_0 = arith.constant 0 : i32
    return %arg0, %arg1, %c0_i32 : i32, i32, i32
  }
  func.func @transform_17(%arg0: i32, %arg1: i32, %arg2: memref<2xi32, #tpu.memory_space<smem>>) -> (i32, i32, i32) {
    %c0_i32 = arith.constant 0 : i32
    %c0_i32_0 = arith.constant 0 : i32
    return %arg0, %arg1, %c0_i32 : i32, i32, i32
  }
}

</mosaic_0001>

<bundles_post_ra>
// kernel: tpu_custom_call.1
= control target key start
LH: loop header
LB: loop body
LE: loop exit
PB: predicated region body
PF: predicated region fallthrough
CT: control target
= control target key end

     0   :  { %s2609_s30 = smov [#allocation3]   ;;  %s3017_s0 = inlined_call_operand.hbm [shape: s32[2], index: 0, kind: input, shape index: {}]   ;;  %s3018_s1 = inlined_call_operand.hbm [shape: bf16[2,8,128], index: 1, kind: input, shape index: {}]   ;;  %s3019_s2 = inlined_call_operand.hbm [shape: bf16[2,8,128], index: 2, kind: input, shape index: {}]   ;;  %s3020_s3 = inlined_call_operand.hbm [shape: bf16[2,8,128], index: 3, kind: input, shape index: {}]   ;;  %s3021_s4 = inlined_call_operand.hbm [shape: bf16[128,128], index: 4, kind: input, shape index: {}]   ;;  %s3022_s5 = inlined_call_operand.hbm [shape: bf16[128,128], index: 5, kind: input, shape index: {}]   ;;  %s3023_s6 = inlined_call_operand.hbm [shape: bf16[128,128], index: 6, kind: input, shape index: {}]   ;;  %s3024_s7 = inlined_call_operand.vmem [shape: f32[1,128], index: 7, kind: input, shape index: {}]   ;;  %s3025_s8 = inlined_call_operand.vmem [shape: f32[1,128], index: 8, kind: input, shape index: {}]   ;;  %s3026_s9 = inlined_call_operand.hbm [shape: bf16[128,128], index: 9, kind: input, shape index: {}]   ;;  %s3027_s10 = inlined_call_operand.vmem [shape: f32[1,128], index: 10, kind: input, shape index: {}]   ;;  %s3028_s11 = inlined_call_operand.hbm [shape: bf16[128,128], index: 11, kind: input, shape index: {}]   ;;  %s3029_s12 = inlined_call_operand.vmem [shape: f32[1,128], index: 12, kind: input, shape index: {}]   ;;  %s3030_s13 = inlined_call_operand.hbm [shape: bf16[128,128], index: 13, kind: input, shape index: {}]   ;;  %s3031_s14 = inlined_call_operand.vmem [shape: f32[1,128], index: 14, kind: input, shape index: {}]   ;;  %s3032_s15 = inlined_call_operand.hbm [shape: bf16[128,128], index: 15, kind: input, shape index: {}]   ;;  %s3033_s16 = inlined_call_operand.vmem [shape: f32[1,128], index: 16, kind: input, shape index: {}]   ;;  %s3034_s17 = inlined_call_operand.hbm [shape: bf16[2,8,128], index: 17, kind: output, shape index: {0}]   ;;  %s3035_s18 = inlined_call_operand.hbm [shape: f32[2,8,128], index: 18, kind: output, shape index: {1}]  }
   0x1   :  { %3051 = sst [smem:[#allocation40_spill]] %s3017_s0 }
   0x2   :  { %3052 = sst [smem:[#allocation41_spill]] %s3018_s1 }
   0x3   :  { %3053 = sst [smem:[#allocation42_spill]] %s3019_s2 }
   0x4   :  { %3054 = sst [smem:[#allocation43_spill]] %s3021_s4 }
   0x5   :  { %3055 = sst [smem:[#allocation44_spill]] %s3022_s5 }
   0x6   :  { %3056 = sst [smem:[#allocation45_spill]] %s3023_s6 }
   0x7   :  { %3057 = sst [smem:[#allocation46_spill]] %s3026_s9 }
   0x8   :  { %3058 = sst [smem:[#allocation47_spill]] %s3027_s10 }
   0x9   :  { %3059 = sst [smem:[#allocation48_spill]] %s3028_s11 }
   0xa   :  { %3060 = sst [smem:[#allocation49_spill]] %s3029_s12 }
   0xb   :  { %3061 = sst [smem:[#allocation50_spill]] %s3030_s13 }
   0xc   :  { %3062 = sst [smem:[#allocation51_spill]] %s3031_s14 }
   0xd   :  { %3063 = sst [smem:[#allocation52_spill]] %s3032_s15 }
   0xe   :  { %3064 = sst [smem:[#allocation53_spill]] %s3033_s16 }
   0xf   :  { %3065 = sst [smem:[#allocation54_spill]] %s3034_s17 }
  0x10   :  { %3066 = sst [smem:[#allocation55_spill]] %s3035_s18 }
  0x11   :  { %s3067_s29 = sld [smem:[#allocation40_spill]] }
  0x17   :  { %s25_s12 = sshll.u32 %s3067_s29, 4  ;;  %s26_s12 = int_to_ptr.hbm [resolvable:$true] %s25_s12 }
  0x18   :  { %28 = dma.hbm_to_smem %s26_s12, 16, %s2609_s30, [#allocation2] }
  0x19   :  { %2551 = dma.done.wait [#allocation2], 16 }
  0x1a   :  { %2552 = vsyncadd [#allocation2], 4294967280 }
  0x1b   :  { %31 = sfence }
  0x1c   :  { %32 = vsyncpa [#allocation5], 0 }
  0x1d   :  { %34 = vsyncpa [#allocation5 + $0x1], 0 }
  0x1e   :  { %35 = vsyncpa [#allocation8], 0 }
  0x1f   :  { %37 = vsyncpa [#allocation8 + $0x1], 0 }
  0x20   :  { %38 = vsyncpa [#allocation11], 0 }
  0x21   :  { %39 = vsyncpa [#allocation14], 0 }
  0x22   :  { %40 = vsyncpa [#allocation17], 0 }
  0x23   :  { %41 = vsyncpa [#allocation20], 0 }
  0x24   :  { %42 = vsyncpa [#allocation6], 0 }
  0x25   :  { %44 = vsyncpa [#allocation6 + $0x1], 0 }
  0x26   :  { %45 = vsyncpa [#allocation23], 0 }
  0x27   :  { %47 = vsyncpa [#allocation23 + $0x1], 0  ;;  %s2718_s0 = smov 0   ;;  %s2720_s19 = smov 0  }
  0x28   :  { %s2722_s12 = smov 0   ;;  %s2724_s1 = smov 0  }
  0x29   :  { %s2726_s20 = smov 0   ;;  %s2728_s21 = smov 0  }
  0x2a LB: > { %3068 = sst [smem:[#allocation33_spill]] %s2587_s0  ;;  %s2749_s22 = sadd.s32 4294967295, %s2607_s21   ;;  %s2607_s21 = sphi %s2728_s21, %s53_s21   ;;  %s2603_s20 = sphi %s2726_s20, %s3106_s20   ;;  %s2599_s1 = sphi %s2724_s1, %s3105_s1   ;;  %s2595_s12 = sphi %s2722_s12, %s3109_s12   ;;  %s2591_s19 = sphi %s2720_s19, %s3108_s19   ;;  %s2587_s0 = sphi %s2718_s0, %s3107_s0  }
  0x2b   : > { %3069 = sst [smem:[#allocation34_spill]] %s2603_s20  ;;  %p1682_p0 = scmp.ge.s32.totalorder %s2607_s21, 1 }
  0x2c   : > { %3070 = sst [smem:[#allocation35_spill]] %s2607_s21  ;;  %p88_p1 = scmp.eq.s32.totalorder %s2749_s22, 0 }
  0x2d   : > { %p483_p2 = scmp.lt.s32.totalorder %s2607_s21, 3  ;;  %s3071_s4 = sld [smem:[#allocation43_spill]] }
  0x2e   : > { %s2610_s26 = smov [#allocation10]   ;;  %p1690_p6 = scmp.ge.s32.totalorder %s2607_s21, 2 }
  0x2f   : > { %p2757_p3 = pnand %p1682_p0, %p483_p2  ;;  %s496_s27 = sshll.u32 %s2610_s26, 4  ;;  %s497_s27 = int_to_ptr.vmem [resolvable:$true] %s496_s27 }
  0x30   : > { %s3074_s6 = sld [smem:[#allocation45_spill]]  ;;  %s3037_s23 = smov 64  }
  0x31   : > { %p2035_p4 = pneg %p2757_p3  ;;  %s3039_s26 = smov 4  }
  0x32   : > { %s3075_s11 = sld [smem:[#allocation48_spill]]  ;;  %s65_s29 = sadd.s32 1, %s2603_s20 }
  0x33   : > { %s494_s24 = sshll.u32 %s3071_s4, 4  ;;  %p2765_p5 = pnand %p2035_p4, %p88_p1  ;;  %s495_s24 = int_to_ptr.hbm [resolvable:$true] %s494_s24 }
  0x34   : > { %s2613_s4 = smov [#allocation13]   ;;  %s74_s30 = sadd.s32 1, %s2595_s12 }
  0x35   : > { %2038 = dma.hbm_to_vmem [thread:$0]  (!%p2765_p5), %s495_s24, 1024, %s497_s27, [#allocation11], %s3037_s23, %s3037_s23, %s3039_s26  }
  0x36   : > { %s522_s2 = sshll.u32 %s3074_s6, 4  ;;  %s524_s17 = sshll.u32 %s2613_s4, 4  ;;  %s523_s2 = int_to_ptr.hbm [resolvable:$true] %s522_s2  ;;  %s525_s17 = int_to_ptr.vmem [resolvable:$true] %s524_s17 }
  0x37   : > { %2044 = dma.hbm_to_vmem [thread:$0]  (!%p2765_p5), %s523_s2, 1024, %s525_s17, [#allocation14], %s3037_s23, %s3037_s23, %s3039_s26  }
  0x38   : > { %s559_s6 = sshll.u32 %s3075_s11, 4  ;;  %s2614_s24 = smov [#allocation16]   ;;  %s560_s6 = int_to_ptr.hbm [resolvable:$true] %s559_s6 }
  0x39   : > { %s561_s27 = sshll.u32 %s2614_s24, 4  ;;  %s1681_s4 = sadd.s32 4294967294, %s2607_s21   ;;  %s562_s27 = int_to_ptr.vmem [resolvable:$true] %s561_s27 }
  0x3a   : > { %2050 = dma.hbm_to_vmem [thread:$0]  (!%p2765_p5), %s560_s6, 1024, %s562_s27, [#allocation17], %s3037_s23, %s3037_s23, %s3039_s26  }
  0x3b   : > { %p67_p7 = scmp.ge.s32.totalorder %s65_s29, 2  ;;  %p81_p8 = scmp.ne.s32.totalorder %s2595_s12, %s2591_s19 }
  0x3c   : > { %p82_p9 = scmp.eq.s32.totalorder %s2607_s21, 0  ;;  %p87_p10 = scmp.ne.s32.totalorder %s2591_s19, %s2587_s0 }
  0x3d   : > { %s3111_s29 = smov (%p67_p7, %s65_s29), 0  ;;  %p442_p13 = scmp.eq.s32.totalorder %s2749_s22, 1 }
  0x3e   : > { %3076 = sst [smem:[#allocation36_spill]] %s3111_s29  ;;  %p2801_p11 = por %p82_p9, %p81_p8 }
  0x3f   : > { %p2807_p12 = por %p88_p1, %p87_p10  ;;  %s69_s2 = ssub.s32 %s2603_s20, %s3111_s29 }
  0x40   : > { %p72_p0 = scmp.eq.s32.totalorder %s69_s2, 0  ;;  %p448_p2 = scmp.eq.s32.totalorder %s1681_s4, 1 }
  0x41   : > { %p2814_p4 = por %p442_p13, %p81_p8  ;;  %p2081_p7 = scmp.lt.s32.totalorder %s2607_s21, 2 }
  0x42   : > { %s2820_s27 = scalar_select %p72_p0, %s2595_s12, %s74_s30  }
  0x43   : > { %s3079_s24 = scalar_select %p2814_p4, 1, 0 }
  0x44   : > { %3081 = sst [smem:[#allocation38_spill]] %s2820_s27  ;;  %p2822_p9 = por %p448_p2, %p87_p10 }
  0x45   : > { %3080 = sst [smem:[#allocation37_spill]] %s3079_s24  ;;  %s3046_s26 = sand.u32 1, %s2595_s12  }
  0x46   : > { %s3082_s23 = scalar_select %p2822_p9, 1, 0 }
  0x47   : > { %s2829_s11 = sshll.u32 %s3046_s26, 2  ;;  %s2832_s29 = sshll.u32 %s2603_s20, 2 }
  0x48   : > { %3083 = sst [smem:[#allocation39_spill]] %s3082_s23  ;;  %p2836_p8 = pnand %p2081_p7, %p2801_p11 }
  0x49   : > { %s632_s30 = sand.u32 1, %s2607_s21   ;;  %s3085_s0 = sld [smem:[#allocation42_spill]] }
  0x4a   : > { %s636_s24 = scalar_lea.vmem [#allocation7], %s2829_s11  ;;  %s2846_s20 = scalar_lea.sflag [#allocation8], %s632_s30 }
  0x4b   : > { %s645_s26 = sshll.u32 %s636_s24, 4  ;;  %s3086_s5 = sld [smem:[#allocation44_spill]]  ;;  %s646_s26 = int_to_ptr.vmem [resolvable:$true] %s645_s26 }
  0x4c   : > { %s2615_s21 = smov [#allocation12]   ;;  %s3087_s9 = sld [smem:[#allocation46_spill]] }
  0x4d   : > { %s510_s10 = sshll.u32 %s2615_s21, 4  ;;  %s3088_s27 = smov 4   ;;  %s511_s10 = int_to_ptr.vmem [resolvable:$true] %s510_s10 }
  0x4e   : > { %s3089_s30 = smov 64   ;;  %s3090_s13 = sld [smem:[#allocation50_spill]] }
  0x4f   : > { %s641_s23 = scalar_lea.hbm %s3085_s0, %s2832_s29  ;;  %s3091_s15 = sld [smem:[#allocation52_spill]] }
  0x50   : > { %s643_s14 = sshll.u32 %s641_s23, 4  ;;  %s3092_s2 = sld [smem:[#allocation41_spill]]  ;;  %s644_s14 = int_to_ptr.hbm [resolvable:$true] %s643_s14 }
  0x51   : > { %2063 = dma.hbm_to_vmem [thread:$0]  (!%p2836_p8), %s644_s14, 64, %s646_s26, %s2846_s20  }
  0x52   : > { %s508_s16 = sshll.u32 %s3086_s5, 4  ;;  %s542_s24 = sshll.u32 %s3087_s9, 4  ;;  %s509_s16 = int_to_ptr.hbm [resolvable:$true] %s508_s16  ;;  %s543_s24 = int_to_ptr.hbm [resolvable:$true] %s542_s24 }
  0x53   : > { %2041 = dma.hbm_to_vmem [thread:$0]  (!%p2765_p5), %s509_s16, 1024, %s511_s10, [#allocation11], %s3089_s30, %s3089_s30, %s3088_s27  }
  0x54   : > { %s2616_s14 = smov [#allocation15]   ;;  %s576_s21 = sshll.u32 %s3090_s13, 4  ;;  %s577_s21 = int_to_ptr.hbm [resolvable:$true] %s576_s21 }
  0x55   : > { %s544_s18 = sshll.u32 %s2616_s14, 4  ;;  %s593_s10 = sshll.u32 %s3091_s15, 4  ;;  %s545_s18 = int_to_ptr.vmem [resolvable:$true] %s544_s18  ;;  %s594_s10 = int_to_ptr.hbm [resolvable:$true] %s593_s10 }
  0x56   : > { %2047 = dma.hbm_to_vmem [thread:$0]  (!%p2765_p5), %s543_s24, 1024, %s545_s18, [#allocation14], %s3089_s30, %s3089_s30, %s3088_s27  }
  0x57   : > { %s2617_s16 = smov [#allocation18]   ;;  %s2618_s14 = smov [#allocation19]  }
  0x58   : > { %s578_s23 = sshll.u32 %s2617_s16, 4  ;;  %s595_s26 = sshll.u32 %s2618_s14, 4  ;;  %s579_s23 = int_to_ptr.vmem [resolvable:$true] %s578_s23  ;;  %s596_s26 = int_to_ptr.vmem [resolvable:$true] %s595_s26 }
  0x59   : > { %2053 = dma.hbm_to_vmem [thread:$0]  (!%p2765_p5), %s577_s21, 1024, %s579_s23, [#allocation17], %s3089_s30, %s3089_s30, %s3088_s27  }
  0x5a   : > { %2056 = dma.hbm_to_vmem [thread:$0]  (!%p2765_p5), %s594_s10, 1024, %s596_s26, [#allocation20], %s3089_s30, %s3089_s30, %s3088_s27  }
  0x5b   : > { %s621_s17 = scalar_lea.hbm %s3092_s2, %s2832_s29  ;;  %s616_s0 = scalar_lea.vmem [#allocation4], %s2829_s11 }
  0x5c   : > { %s625_s16 = sshll.u32 %s616_s0, 4  ;;  %s623_s5 = sshll.u32 %s621_s17, 4  ;;  %s626_s16 = int_to_ptr.vmem [resolvable:$true] %s625_s16  ;;  %s624_s5 = int_to_ptr.hbm [resolvable:$true] %s623_s5 }
  0x5d   : > { %s3093_s21 = sand.u32 1, %s2595_s12   ;;  %s661_s9 = scalar_lea.hbm %s3020_s3, %s2832_s29 }
  0x5e   : > { %s613_s23 = scalar_lea.sflag [#allocation5], %s3093_s21  ;;  %s656_s13 = scalar_lea.vmem [#allocation9], %s2829_s11 }
  0x5f   : > { %2060 = dma.hbm_to_vmem [thread:$0]  (!%p2836_p8), %s624_s5, 64, %s626_s16, %s613_s23  }
  0x60   : > { %s665_s15 = sshll.u32 %s656_s13, 4  ;;  %s663_s27 = sshll.u32 %s661_s9, 4  ;;  %s666_s15 = int_to_ptr.vmem [resolvable:$true] %s665_s15  ;;  %s664_s27 = int_to_ptr.hbm [resolvable:$true] %s663_s27 }
  0x61   : > { %2066 = dma.hbm_to_vmem [thread:$0]  (!%p2836_p8), %s664_s27, 64, %s666_s15, %s2846_s20  }
  0x62   : > { %674 = sbr.rel (%p2757_p3) target bundleno = 701 (0x2bd), region = 84  ;;  %s2903_s30 = sand.u32 (!%p2757_p3), 1, %s2591_s19  }
  0x63   : > { %s2906_s5 = sshll.u32 (!%p2757_p3), %s2903_s30, 2  ;;  %s677_s29 = scalar_lea.sflag (!%p2757_p3), [#allocation5], %s2903_s30 }
  0x64   : > { %s680_s11 = scalar_lea.vmem (!%p2757_p3), [#allocation4], %s2906_s5 }
  0x67   : > { %2554 = dma.done.wait (%p2807_p12), %s677_s29, 64  }
  0x68   : > { %2556 = vsyncadd (%p2807_p12), %s677_s29, 4294967232  ;;  %s686_s9 = sand.u32 1, %s2749_s22   ;;  %s690_s15 = scalar_lea.vmem [#allocation7], %s2906_s5 }
  0x69   : > { %s687_s13 = scalar_lea.sflag [#allocation8], %s686_s9 }
  0x6a   : > { %2558 = dma.done.wait (%p2807_p12), %s687_s13, 128  }
  0x6b   : > { %2560 = vsyncadd (%p2807_p12), %s687_s13, 4294967168  ;;  %s700_s20 = scalar_lea.vmem [#allocation9], %s2906_s5 }
  0x6c   : > { %2562 = dma.done.wait (%p88_p1), [#allocation11], 2048  }
  0x6d   : > { %2564 = vsyncadd (%p88_p1), [#allocation11], 4294965248 }
  0x6e   : > { %2566 = dma.done.wait (%p88_p1), [#allocation14], 2048  }
  0x6f   : > { %2568 = vsyncadd (%p88_p1), [#allocation14], 4294965248 }
  0x70   : > { %2570 = dma.done.wait (%p88_p1), [#allocation17], 2048  }
  0x71   : > { %2572 = vsyncadd (%p88_p1), [#allocation17], 4294965248 }
  0x72   : > { %2574 = dma.done.wait (%p88_p1), [#allocation20], 1024  }
  0x73   : > { %2576 = vsyncadd (%p88_p1), [#allocation20], 4294966272  ;;  %v1956_v0 = vld [vmem:[#allocation12 + $0x38] sm:$0xff]  ;;  %v1955_v3 = vld [vmem:[#allocation12 + $0x30] sm:$0xff]  ;;  %v1137_v44 = vlaneseq  ;;  %s1154_s22 = sld [smem:[#allocation3 + %s2599_s1]]  ;;  %v2619_v58 = vmov 0.0  }
  0x74   : > { %v1948_v1 = vld [vmem:[#allocation10 + $0x38] sm:$0xff]  ;;  %884 = vmatpush.bf16.msra.mxu0 %v1956_v0  ;;  %v1947_v4 = vld [vmem:[#allocation10 + $0x30] sm:$0xff]  ;;  %v1954_v6 = vld [vmem:[#allocation12 + $0x28] sm:$0xff]  ;;  %s3094_s18 = sld [smem:[#allocation47_spill]]  ;;  %s1938_s28 = sshll.u32 %s2599_s1, 3 }
  0x75   : > { %v1964_v2 = vld [vmem:[#allocation13 + $0x38] sm:$0xff]  ;;  %945 = vmatpush.bf16.msra.mxu1 %v1948_v1  ;;  %v1963_v5 = vld [vmem:[#allocation13 + $0x30] sm:$0xff]  ;;  %v1946_v7 = vld [vmem:[#allocation10 + $0x28] sm:$0xff]  ;;  %v1138_v46 = vshrl.u32 %v1137_v44, 7  ;;  %s3095_s0 = sld [smem:[#allocation53_spill]]  ;;  %s1709_s14 = sshll.u32 %s2903_s30, 3 }
  0x76   : > { %1023 = vmatpush.bf16.msra.mxu2 %v1964_v2  ;;  %v1962_v8 = vld [vmem:[#allocation13 + $0x28] sm:$0xff]  ;;  %v1972_v9 = vld [vmem:[#allocation19 + $0x38] sm:$0xff]  ;;  %v1953_v10 = vld [vmem:[#allocation12 + $0x20] sm:$0xff]  ;;  %s3096_s23 = sld [smem:[#allocation49_spill]]  ;;  %s1423_s25 = scalar_lea.sflag [#allocation23], %s2903_s30 }
  0x77   : > { %v1945_v11 = vld [vmem:[#allocation10 + $0x20] sm:$0xff]  ;;  %1112 = vmatpush.bf16.msra.mxu3 %v1972_v9  ;;  %v1971_v13 = vld [vmem:[#allocation19 + $0x30] sm:$0xff]  ;;  %v1952_v14 = vld [vmem:[#allocation12 + $0x18] sm:$0xff]  ;;  %v1145_v48 = vand.u32 3, %v1138_v46 }
  0x78   : > { %885 = vmatpush.bf16.msra.mxu0 %v1955_v3  ;;  %v1961_v12 = vld [vmem:[#allocation13 + $0x20] sm:$0xff]  ;;  %v1944_v15 = vld [vmem:[#allocation10 + $0x18] sm:$0xff]  ;;  %v1970_v17 = vld [vmem:[#allocation19 + $0x28] sm:$0xff] }
  0x79   : > { %946 = vmatpush.bf16.msra.mxu1 %v1947_v4  ;;  %v1960_v16 = vld [vmem:[#allocation13 + $0x18] sm:$0xff]  ;;  %v1951_v18 = vld [vmem:[#allocation12 + $0x10] sm:$0xff]  ;;  %v1969_v21 = vld [vmem:[#allocation19 + $0x20] sm:$0xff]  ;;  %v1155_v49 = vstv %s1154_s22  ;;  %vm1153_vm0 = vcmp.eq.s32.totalorder %v1145_v48, 0 }
  0x7a   : > { %1024 = vmatpush.bf16.msra.mxu2 %v1963_v5  ;;  %v1943_v19 = vld [vmem:[#allocation10 + $0x10] sm:$0xff]  ;;  %v1950_v22 = vld [vmem:[#allocation12 + $0x8] sm:$0xff]  ;;  %v1949_v25 = vld [vmem:[#allocation12] sm:$0xff]  ;;  %vm1156_vm1 = vcmp.lt.s32.totalorder %v1138_v46, %v1155_v49 }
  0x7b   : > { %1113 = vmatpush.bf16.msra.mxu3 %v1971_v13  ;;  %v1959_v20 = vld [vmem:[#allocation13 + $0x10] sm:$0xff]  ;;  %v1942_v23 = vld [vmem:[#allocation10 + $0x8] sm:$0xff]  ;;  %v1941_v26 = vld [vmem:[#allocation10] sm:$0xff] }
  0x7c   : > { %886 = vmatpush.bf16.msra.mxu0 %v1954_v6  ;;  %v1958_v24 = vld [vmem:[#allocation13 + $0x8] sm:$0xff]  ;;  %v1957_v27 = vld [vmem:[#allocation13] sm:$0xff]  ;;  %v1980_v28 = vld [vmem:[#allocation15 + $0x38] sm:$0xff] }
  0x7d   : > { %947 = vmatpush.bf16.msra.mxu1 %v1946_v7  ;;  %v819_v29 = vld [vmem:[%s690_s15] sm:$0xf]  ;;  %v802_v30 = vld [vmem:[%s680_s11] sm:$0xf]  ;;  %v958_v31 = vld [vmem:[%s700_s20] sm:$0xf] }
  0x7e   : > { %1025 = vmatpush.bf16.msra.mxu2 %v1962_v8  ;;  %v1979_v32 = vld [vmem:[#allocation15 + $0x30] sm:$0xff]  ;;  %v1978_v33 = vld [vmem:[#allocation15 + $0x28] sm:$0xff]  ;;  %v1968_v34 = vld [vmem:[#allocation19 + $0x18] sm:$0xff]  ;;  %s3097_s11 = sld [smem:[#allocation55_spill]]  ;;  %s801_s15 = scalar_lea.vmem [#allocation22], %s1709_s14 }
  0x7f   : > { %1114 = vmatpush.bf16.msra.mxu3 %v1970_v17  ;;  %v1977_v35 = vld [vmem:[#allocation15 + $0x20] sm:$0xff]  ;;  %v1967_v36 = vld [vmem:[#allocation19 + $0x10] sm:$0xff]  ;;  %v1976_v37 = vld [vmem:[#allocation15 + $0x18] sm:$0xff]  ;;  %s1451_s20 = sshll.u32 %s801_s15, 4  ;;  %s1452_s20 = int_to_ptr.vmem [resolvable:$true] %s1451_s20 }
  0x80   : > { %887 = vmatpush.bf16.msra.mxu0 %v1953_v10  ;;  %v1966_v38 = vld [vmem:[#allocation19 + $0x8] sm:$0xff]  ;;  %v1975_v39 = vld [vmem:[#allocation15 + $0x10] sm:$0xff]  ;;  %v1965_v40 = vld [vmem:[#allocation19] sm:$0xff] }
  0x81   : > { %948 = vmatpush.bf16.msra.mxu1 %v1945_v11  ;;  %v1974_v41 = vld [vmem:[#allocation15 + $0x8] sm:$0xff]  ;;  %v1973_v42 = vld [vmem:[#allocation15] sm:$0xff]  ;;  %v1988_v43 = vld [vmem:[#allocation16 + $0x38] sm:$0xff] }
  0x82   : > { %1026 = vmatpush.bf16.msra.mxu2 %v1961_v12  ;;  %v1987_v45 = vld [vmem:[#allocation16 + $0x30] sm:$0xff]  ;;  %v1986_v47 = vld [vmem:[#allocation16 + $0x28] sm:$0xff]  ;;  %v1985_v50 = vld [vmem:[#allocation16 + $0x20] sm:$0xff] }
  0x83   : > { %1115 = vmatpush.bf16.msra.mxu3 %v1969_v21  ;;  %v1984_v53 = vld [vmem:[#allocation16 + $0x18] sm:$0xff]  ;;  %vm1157_vm2 = vmand %vm1153_vm0, %vm1156_vm1  ;;  %v2149_v55 = vld [vmem:[%s3024_s7] ss:$0 sm:$0xff] }
  0x84   : > { %888 = vmatpush.bf16.msra.mxu0 %v1952_v14  ;;  %v1983_v56 = vld [vmem:[#allocation16 + $0x10] sm:$0xff]  ;;  %v1838_v59 = vsel %vm1157_vm2, 1.0, %v2619_v58  ;;  %v2150_v63 = vld [vmem:[%s3025_s8] ss:$0 sm:$0xff]  ;;  %v1981_v10 = vld [vmem:[#allocation16] sm:$0xff]  ;;  %s1449_s13 = scalar_lea.hbm %s3097_s11, %s1938_s28  ;;  %s2491_s24 = scalar_lea.hbm %s3097_s11, 16 }
  0x85   : > { %949 = vmatpush.bf16.msra.mxu1 %v1944_v15  ;;  %v1160_v1 = vsub.f32 1.0, %v1838_v59  ;;  %v1166_v3 = vmul.f32 %v2150_v63, %v1838_v59  ;;  %v1982_v9 = vld [vmem:[#allocation16 + $0x8] sm:$0xff]  ;;  %v1996_v11 = vld [vmem:[#allocation18 + $0x38] sm:$0xff]  ;;  %v1995_v12 = vld [vmem:[#allocation18 + $0x30] sm:$0xff]  ;;  %s1453_s22 = sshll.u32 %s1449_s13, 4  ;;  %s1454_s22 = int_to_ptr.hbm [resolvable:$true] %s1453_s22 }
  0x86   : > { %1027 = vmatpush.bf16.msra.mxu2 %v1960_v16  ;;  %v1994_v13 = vld [vmem:[#allocation18 + $0x28] sm:$0xff]  ;;  %v1993_v14 = vld [vmem:[#allocation18 + $0x20] sm:$0xff]  ;;  %s2485_s6 = sshra.s32 %s1454_s22, 4  ;;  %s2486_s6 = int_to_ptr.hbm [resolvable:$true] %s2485_s6 }
  0x87   : > { %1116 = vmatpush.bf16.msra.mxu3 %v1968_v34  ;;  %v2151_v15 = vld [vmem:[%s3094_s18] ss:$0 sm:$0xff]  ;;  %s2487_s4 = scalar_lea.hbm %s2486_s6, 8  ;;  %p2492_p10 = scmp.lt.s32.totalorder %s2486_s6, %s3097_s11 }
  0x88   : > { %889 = vmatpush.bf16.msra.mxu0 %v1951_v18  ;;  %v2152_v16 = vld [vmem:[%s3095_s0] ss:$0 sm:$0xff]  ;;  %p2488_p1 = scmp.ne.s32.totalorder %s2486_s6, %s2487_s4  ;;  %p2493_p11 = scmp.lt.s32.totalorder %s2491_s24, %s2487_s4 }
  0x89   : > { %950 = vmatpush.bf16.msra.mxu1 %v1943_v19 }
  0x8a   : > { %1028 = vmatpush.bf16.msra.mxu2 %v1959_v20  ;;  %p2489_p3 = pnand %p2488_p1, %p2814_p4  ;;  %p2494_p12 = por %p2493_p11, %p2492_p10 }
  0x8b   : > { %1117 = vmatpush.bf16.msra.mxu3 %v1967_v36 }
  0x8c   : > { %890 = vmatpush.bf16.msra.mxu0 %v1950_v22  ;;  %p2490_p5 = pneg %p2489_p3 }
  0x8d   : > { %951 = vmatpush.bf16.msra.mxu1 %v1942_v23 }
  0x8e   : > { %1029 = vmatpush.bf16.msra.mxu2 %v1958_v24  ;;  %p2495_p13 = pnand %p2494_p12, %p2490_p5 }
  0x8f   : > { %1118 = vmatpush.bf16.msra.mxu3 %v1966_v38 }
  0x90   : > { %891 = vmatpush.bf16.msra.mxu0 %v1949_v25  ;;  %v1992_v25 = vld [vmem:[#allocation18 + $0x18] sm:$0xff] }
  0x91   : > { %952 = vmatpush.bf16.msra.mxu1 %v1941_v26  ;;  %v1991_v26 = vld [vmem:[#allocation18 + $0x10] sm:$0xff] }
  0x92   : > { %1030 = vmatpush.bf16.msra.mxu2 %v1957_v27  ;;  %v1990_v27 = vld [vmem:[#allocation18 + $0x8] sm:$0xff] }
  0x93   : > { %892 = vmatmul.bf16.vlgmr.msra.gmra.mxu0 %v819_v29  ;;  %1119 = vmatpush.bf16.msra.mxu3 %v1965_v40 }
  0x94   : > { %1237 = vmatpush.bf16.msrb.mxu0 %v1980_v28  ;;  %953 = vmatmul.bf16.vlgmr.msra.gmra.mxu1 %v802_v30  ;;  %v1989_v28 = vld [vmem:[#allocation18] sm:$0xff] }
  0x95   : > { %1031 = vmatmul.bf16.vlgmr.msra.gmra.mxu2 %v958_v31  ;;  %1320 = vmatpush.bf16.msrb.mxu1 %v1988_v43 }
  0x96   : > { %1402 = vmatpush.bf16.msrb.mxu2 %v1996_v11 }
  0x98   : > { %1238 = vmatpush.bf16.msrb.mxu0 %v1979_v32  ;;  %v2153_v32 = vld [vmem:[%s3096_s23] ss:$0 sm:$0xff] }
  0x99   : > { %1321 = vmatpush.bf16.msrb.mxu1 %v1987_v45 }
  0x9a   : > { %1403 = vmatpush.bf16.msrb.mxu2 %v1995_v12 }
  0x9c   : > { %1239 = vmatpush.bf16.msrb.mxu0 %v1978_v33 }
  0x9d   : > { %1322 = vmatpush.bf16.msrb.mxu1 %v1986_v47 }
  0x9e   : > { %1404 = vmatpush.bf16.msrb.mxu2 %v1994_v13 }
  0xa0   : > { %1240 = vmatpush.bf16.msrb.mxu0 %v1977_v35 }
  0xa1   : > { %1323 = vmatpush.bf16.msrb.mxu1 %v1985_v50 }
  0xa2   : > { %1405 = vmatpush.bf16.msrb.mxu2 %v1993_v14 }
  0xa4   : > { %1241 = vmatpush.bf16.msrb.mxu0 %v1976_v37 }
  0xa5   : > { %1324 = vmatpush.bf16.msrb.mxu1 %v1984_v53 }
  0xa6   : > { %1406 = vmatpush.bf16.msrb.mxu2 %v1992_v25 }
  0xa8   : > { %1242 = vmatpush.bf16.msrb.mxu0 %v1975_v39 }
  0xa9   : > { %1325 = vmatpush.bf16.msrb.mxu1 %v1983_v56 }
  0xaa   : > { %1407 = vmatpush.bf16.msrb.mxu2 %v1991_v26 }
  0xac   : > { %1243 = vmatpush.bf16.msrb.mxu0 %v1974_v41 }
  0xad   : > { %1326 = vmatpush.bf16.msrb.mxu1 %v1982_v9 }
  0xae   : > { %1408 = vmatpush.bf16.msrb.mxu2 %v1990_v27 }
  0xb0   : > { %1244 = vmatpush.bf16.msrb.mxu0 %v1973_v42 }
  0xb1   : > { %1327 = vmatpush.bf16.msrb.mxu1 %v1981_v10 }
  0xb2   : > { %1409 = vmatpush.bf16.msrb.mxu2 %v1989_v28 }
 0x110   : > { %v893_v51 = vpop.f32.mrf.mxu0 }
 0x111   : > { %v954_v52 = vpop.f32.mrf.mxu1 }
 0x112   : > { %v955_v54 = vadd.f32 %v954_v52, %v893_v51 }
 0x118   : > { %v1032_v57 = vpop.f32.mrf.mxu2  ;;  %v895_v61 = vpop.f32.mrf.mxu0 }
 0x119   : > { %v1036_v60 = vadd.f32 %v1032_v57, %v955_v54  ;;  %v956_v62 = vpop.f32.mrf.mxu1 }
 0x11b   : > { %v1041_v0 = vadd.f32 %v2149_v55, %v1036_v60 }
 0x11d   : > { %v1042_v2 = vmax.f32 %v1041_v0, 0.0 }
 0x11f   : > { %v1161_v4 = vmul.f32 %v1160_v1, %v1042_v2  ;;  %v1043_v5 = vpack.c.bf16 %v1042_v2, %v1042_v2 }
 0x120   : > { %v1034_v6 = vpop.f32.mrf.mxu2 }
 0x121   : > { %1120 = vmatmul.bf16.vlgmr.msra.gmra.mxu3 %v1043_v5  ;;  %v1167_v7 = vadd.f32 %v1166_v3, %v1161_v4 }
 0x123   : > { %v1168_v8 = vpack.c.bf16 %v1167_v7, %v1167_v7 }
 0x125   : > { %1245 = vmatmul.bf16.vlgmr.msrb.gmra.mxu0 %v1168_v8 }
 0x1a2   : > { %v1246_v17 = vpop.f32.mrf.mxu0 }
 0x1a3   : > { %v1247_v18 = vadd.f32 %v2151_v15, %v1246_v17 }
 0x1a4   : > { %v1121_v19 = vpop.f32.mrf.mxu3 }
 0x1a5   : > { %v1250_v20 = vmax.f32 %v1247_v18, 0.0  ;;  %v1122_v21 = vadd.f32 %v2152_v16, %v1121_v19 }
 0x1a7   : > { %v1251_v22 = vpack.c.bf16 %v1250_v20, %v1250_v20  ;;  %1125 = vmax.xlane.f32.xlu0 %v1122_v21 }
 0x1a9   : > { %1328 = vmatmul.bf16.vlgmr.msrb.gmra.mxu1 %v1251_v22 }
 0x1aa   : > { %v1248_v23 = vpop.f32.mrf.mxu0 }
 0x1ac   : > { %v1123_v24 = vpop.f32.mrf.mxu3 }
 0x21a   : > { %v1126_v29 = vpop.xlane.xlu0 %1125 }
 0x21b   : > { %v1127_v30 = vsub.f32 %v1122_v21, %v1126_v29 }
 0x21d   : > { %v1128_v31 = vmul.f32 1.442695, %v1127_v30 }
 0x21f   : > { %2155 = vpow2.f32 %v1128_v31 }
 0x225   : > { %v2156_v33 = vpop.eup %2155 }
 0x226   : > { %v1329_v34 = vpop.f32.mrf.mxu1  ;;  %1130 = vadd.xlane.f32.xlu0 %v2156_v33 }
 0x227   : > { %v1330_v35 = vadd.f32 %v2153_v32, %v1329_v34 }
 0x229   : > { %v1333_v36 = vpack.c.bf16 %v1330_v35, %v1330_v35 }
 0x22b   : > { %1410 = vmatmul.bf16.vlgmr.msrb.gmra.mxu2 %v1333_v36 }
 0x22e   : > { %v1331_v37 = vpop.f32.mrf.mxu1 }
 0x299   : > { %v1131_v38 = vpop.xlane.xlu0 %1130 }
 0x29a   : > { %2157 = vlog2.f32 %v1131_v38 }
 0x2a0   : > { %v2158_v39 = vpop.eup %2157 }
 0x2a1   : > { %v1133_v40 = vmul.f32 0.6931472, %v2158_v39 }
 0x2a3   : > { %v1134_v41 = vsub.f32 %v1127_v30, %v1133_v40 }
 0x2a5   : > { %1135 = vst [vmem:[%s801_s15] sm:$0xff] %v1134_v41 }
 0x2a6   : > { %2498 = shalt.err (!%p2495_p13)
}
 0x2a7   : > { %2032 = dma.vmem_to_hbm [thread:$0]  (%p2814_p4), %s1452_s20, 128, %s1454_s22, %s1423_s25  }
 0x2a8   : > { %s1937_s17 = sshll.u32 %s2599_s1, 2  ;;  %s3099_s21 = sld [smem:[#allocation51_spill]] }
 0x2a9   : > { %s3100_s14 = sld [smem:[#allocation54_spill]]  ;;  %s794_s29 = scalar_lea.vmem [#allocation21], %s2906_s5 }
 0x2aa   : > { %s1436_s13 = sshll.u32 %s794_s29, 4  ;;  %s1418_s20 = scalar_lea.sflag [#allocation6], %s2903_s30  ;;  %s1437_s13 = int_to_ptr.vmem [resolvable:$true] %s1436_s13 }
 0x2ae   : > { %v2154_v42 = vld [vmem:[%s3099_s21] ss:$0 sm:$0xff]  ;;  %v1411_v43 = vpop.f32.mrf.mxu2 }
 0x2af   : > { %s1434_s27 = scalar_lea.hbm %s3100_s14, %s1937_s17  ;;  %v1412_v44 = vadd.f32 %v2154_v42, %v1411_v43  ;;  %s2519_s4 = scalar_lea.hbm %s3100_s14, 8 }
 0x2b0   : > { %s1438_s15 = sshll.u32 %s1434_s27, 4  ;;  %s1439_s15 = int_to_ptr.hbm [resolvable:$true] %s1438_s15 }
 0x2b1   : > { %v1415_v45 = vpack.c.bf16 %v1412_v44, %v1412_v44  ;;  %s2513_s1 = sshra.s32 %s1439_s15, 4  ;;  %s2514_s1 = int_to_ptr.hbm [resolvable:$true] %s2513_s1 }
 0x2b2   : > { %s2515_s22 = scalar_lea.hbm %s2514_s1, 4  ;;  %p2520_p8 = scmp.lt.s32.totalorder %s2514_s1, %s3100_s14 }
 0x2b3   : > { %1416 = vst [vmem:[%s794_s29] sm:$0xf] %v1415_v45  ;;  %p2516_p0 = scmp.ne.s32.totalorder %s2514_s1, %s2515_s22  ;;  %p2521_p1 = scmp.lt.s32.totalorder %s2519_s4, %s2515_s22 }
 0x2b5   : > { %p2517_p2 = pnand %p2516_p0, %p2814_p4  ;;  %p2522_p3 = por %p2521_p1, %p2520_p8 }
 0x2b7   : > { %p2518_p7 = pneg %p2517_p2 }
 0x2b9   : > { %p2523_p5 = pnand %p2522_p3, %p2518_p7 }
 0x2bb   : > { %2526 = shalt.err (!%p2523_p5)
}
 0x2bc   : > { %2031 = dma.vmem_to_hbm [thread:$0]  (%p2814_p4), %s1437_s13, 64, %s1439_s15, %s1418_s20   ;;  %v1413_v46 = vpop.f32.mrf.mxu2 }
 0x2bd PF: > { %s3101_s30 = sld [smem:[#allocation33_spill]]  ;;  %p2068_p10 = pnand %p1690_p6, %p2822_p9 }
 0x2be   : > { %s3103_s24 = sld [smem:[#allocation35_spill]] }
 0x2bf   : > { %p2069_p11 = pneg %p2068_p10 }
 0x2c3   : > { %s1465_s18 = sand.u32 1, %s3101_s30  }
 0x2c4   : > { %s1466_s2 = scalar_lea.sflag [#allocation6], %s1465_s18 }
 0x2c5   : > { %2578 = dma.done.wait (%p2069_p11), %s1466_s2, 64  }
 0x2c6   : > { %2580 = vsyncadd (%p2069_p11), %s1466_s2, 4294967232  ;;  %s1476_s17 = scalar_lea.sflag [#allocation23], %s1465_s18 }
 0x2c7   : > { %2582 = dma.done.wait (%p2069_p11), %s1476_s17, 128  }
 0x2c8   : > { %2584 = vsyncadd (%p2069_p11), %s1476_s17, 4294967168  ;;  %s53_s21 = sadd.s32 1, %s3103_s24   ;;  %s3104_s9 = sld [smem:[#allocation38_spill]] }
 0x2c9   : > { %p50_p12 = scmp.ge.s32.totalorder %s53_s21, 4   ;;  %s3105_s1 = sld [smem:[#allocation34_spill]] }
 0x2ca   : > { %s3106_s20 = sld [smem:[#allocation36_spill]]  ;;  %s3107_s0 = smov %s2591_s19 }
 0x2cb   : > { %s3108_s19 = smov %s2595_s12  ;;  %52 = sbr.rel (!%p50_p12) target bundleno = 42 (0x2a), region = 198 }
 0x2ce   : > { %s3109_s12 = smov %s3104_s9 }
 0x2d0   :  { %1482 = vsyncpa [#allocation5], 1 }
 0x2d1   :  { %1484 = vsyncpa [#allocation5 + $0x1], 1 }
 0x2d2   :  { %1485 = vsyncpa [#allocation8], 1 }
 0x2d3   :  { %1487 = vsyncpa [#allocation8 + $0x1], 1 }
 0x2d4   :  { %1488 = vsyncpa [#allocation11], 1 }
 0x2d5   :  { %1489 = vsyncpa [#allocation14], 1 }
 0x2d6   :  { %1490 = vsyncpa [#allocation17], 1 }
 0x2d7   :  { %1491 = vsyncpa [#allocation20], 1 }
 0x2d8   :  { %1492 = vsyncpa [#allocation6], 1 }
 0x2d9   :  { %1494 = vsyncpa [#allocation6 + $0x1], 1 }
 0x2da   :  { %1495 = vsyncpa [#allocation23], 1 }
 0x2db   :  { %1497 = vsyncpa [#allocation23 + $0x1], 1 }

</bundles_post_ra>
